<compile_context>
chip_gen: v7x
topology: tpu7x:2x2x1
jax: 0.10.0
libtpu: 0.0.40
codegen_flags: <defaults>
</compile_context>

<pallas_src>
import functools

import jax
import jax.numpy as jnp
from jax.experimental import pallas as pl
from jax.experimental.pallas import tpu as pltpu


def _make_critic_kernel(num_layers, obs_dim):
    """Fused forward kernel; activations are (features, tile_b), batch on lanes."""

    def kernel(inp_ref, *refs):
        # refs layout:
        #   per hidden layer i: W_i (out, in), aux_i (out, 3) = [bias | gamma | beta]
        #   then:               Wa (last, n_actions), tail (last, 3) = [ba | wq | bq]
        #   last ref is the output row (1, tile_b)
        out_ref = refs[-1]
        p = refs[:-1]

        x = inp_ref[0:obs_dim, :]                      # (obs_dim, tile_b), f32
        for i in range(num_layers):
            w = p[2 * i][...]                          # (out, in)
            aux = p[2 * i + 1][...]                    # (out, 3)
            # Linear (PyTorch weight layout): W @ x + b
            x = jnp.dot(w, x, preferred_element_type=jnp.float32) + aux[:, 0:1]
            # LayerNorm over the feature (sublane) axis; two-pass form, (x - mu)
            # computed once and reused (stable + shorter critical path).
            mu = jnp.mean(x, axis=0, keepdims=True)    # (1, tile_b)
            xc = x - mu
            var = jnp.mean(xc * xc, axis=0, keepdims=True)
            x = xc * jax.lax.rsqrt(var + 1e-5)
            x = x * aux[:, 1:2] + aux[:, 2:3]
            # ReLU on every block except the last one (matches the PyTorch loop).
            if i < num_layers - 1:
                x = jnp.maximum(x, 0.0)

        wa = p[2 * num_layers][...]                    # (last, n_actions)
        tail = p[2 * num_layers + 1][...]              # (last, 3)
        # Action branch fused in registers: a = Wa @ act + ba, then relu(x + a).
        a = jnp.dot(wa, inp_ref[obs_dim:, :],
                    preferred_element_type=jnp.float32) + tail[:, 0:1]
        x = jnp.maximum(x + a, 0.0)
        # q head: VPU multiply + sublane reduction -> lane-dense (1, tile_b) row.
        q = jnp.sum(x * tail[:, 1:2], axis=0, keepdims=True) + tail[0:1, 2:3]
        out_ref[...] = q.astype(out_ref.dtype)

    return kernel


def _pick_tile_b(batch):
    """Lane-dense tile choice: multiple of 128, >=2 steps when possible, <=2048."""
    groups = max(1, (batch + 127) // 128)
    if groups == 1:
        return 128
    half = (groups + 1) // 2           # aim for >= 2 grid steps (v7x megacore)
    return min(half, 16) * 128         # cap at 2048 rows per step


def critic_forward(observation, action, params, num_layers, tile_b=None):
    """params is a flat list: [W_0, aux_0, ..., W_{L-1}, aux_{L-1}, Wa, tail]."""
    batch, obs_dim = observation.shape
    n_actions = action.shape[1]
    feat = obs_dim + n_actions

    if tile_b is None:
        tile_b = _pick_tile_b(batch)
    assert tile_b % 128 == 0, "tile_b must be a multiple of 128 (lane-dense blocks)"

    n_blocks = pl.cdiv(batch, tile_b)
    padded = n_blocks * tile_b

    # Single auxiliary pass: concat obs/act, pad the final partial tile, and put
    # the batch on the lane axis. One input DMA stream per grid step.
    inp = jnp.concatenate(
        [observation.astype(jnp.float32), action.astype(jnp.float32)], axis=1)
    if padded != batch:
        inp = jnp.pad(inp, ((0, padded - batch), (0, 0)))
    inp_t = inp.T                                      # (feat, padded)

    kernel = _make_critic_kernel(num_layers, obs_dim)

    in_specs = [
        pl.BlockSpec((feat, tile_b), lambda i: (0, i)),
    ] + [
        # Full-array blocks with a constant index_map: VMEM-resident across steps.
        pl.BlockSpec(p.shape, lambda i: (0, 0)) for p in params
    ]

    out = pl.pallas_call(
        kernel,
        out_shape=jax.ShapeDtypeStruct((1, padded), jnp.float32),
        grid=(n_blocks,),
        in_specs=in_specs,
        out_specs=pl.BlockSpec((1, tile_b), lambda i: (0, i)),
        compiler_params=pltpu.CompilerParams(
            dimension_semantics=("parallel",),      # megacore sharding on v7x
            vmem_limit_bytes=32 * 1024 * 1024,      # safe on v5e/v6e/v7x
        ),
    )(inp_t, *params)

    # Lane-dense row -> (batch, 1) column; cheap slice, no strided slab read.
    return out[0, :batch][:, None]


def init_params(key, input_dims, hidden_dims, n_actions):
    """Deterministic parameter init mirroring CriticNetwork.__init__ shapes/bounds."""
    neuron_list = [input_dims] + list(hidden_dims)
    params = []
    for i in range(len(neuron_list) - 1):
        fan_in, fan_out = neuron_list[i], neuron_list[i + 1]
        # PyTorch: amp = 1/sqrt(weight.size()[0]) = 1/sqrt(out_features)
        amp = 1.0 / float(fan_out) ** 0.5
        key, k1, k2 = jax.random.split(key, 3)
        w = jax.random.uniform(k1, (fan_out, fan_in), jnp.float32, -amp, amp)
        b = jax.random.uniform(k2, (fan_out, 1), jnp.float32, -amp, amp)
        gamma = jnp.ones((fan_out, 1), jnp.float32)   # nn.LayerNorm default weight
        beta = jnp.zeros((fan_out, 1), jnp.float32)   # nn.LayerNorm default bias
        params += [w, jnp.concatenate([b, gamma, beta], axis=1)]   # (out, 3)

    last = neuron_list[-1]
    # action_value = nn.Linear(n_actions, last): amp = 1/sqrt(last)
    amp_a = 1.0 / float(last) ** 0.5
    key, k1, k2 = jax.random.split(key, 3)
    wa = jax.random.uniform(k1, (last, n_actions), jnp.float32, -amp_a, amp_a)
    ba = jax.random.uniform(k2, (last, 1), jnp.float32, -amp_a, amp_a)

    amp_q = 0.003
    key, k1, k2 = jax.random.split(key, 3)
    wq = jax.random.uniform(k1, (last, 1), jnp.float32, -amp_q, amp_q)  # q.weight.T
    bq = jax.random.uniform(k2, (), jnp.float32, -amp_q, amp_q)
    bq_col = jnp.full((last, 1), bq, jnp.float32)

    params += [wa, jnp.concatenate([ba, wq, bq_col], axis=1)]            # (last, 3)
    return params


def reference_forward(observation, action, params, num_layers):
    """Plain-JAX reference to sanity check kernel semantics."""
    x = observation.astype(jnp.float32)
    for i in range(num_layers):
        w, aux = params[2 * i], params[2 * i + 1]
        x = x @ w.T + aux[:, 0]
        mu = jnp.mean(x, axis=-1, keepdims=True)
        var = jnp.mean((x - mu) ** 2, axis=-1, keepdims=True)
        x = (x - mu) / jnp.sqrt(var + 1e-5)
        x = x * aux[:, 1] + aux[:, 2]
        if i < num_layers - 1:
            x = jnp.maximum(x, 0.0)
    wa, tail = params[2 * num_layers], params[2 * num_layers + 1]
    a = action.astype(jnp.float32) @ wa.T + tail[:, 0]
    x = jnp.maximum(x + a, 0.0)
    return x @ tail[:, 1:2] + tail[0, 2]


if __name__ == "__main__":
    # Small shapes consistent with the module: observation dim 8, two hidden
    # layers of 32, 4 actions, batch of 2.
    batch = 2
    input_dims = 8
    hidden_dims = [32, 32]
    n_actions = 4
    num_layers = len(hidden_dims)

    key = jax.random.PRNGKey(0)
    key, ko, ka, kp = jax.random.split(key, 4)
    observation = jax.random.normal(ko, (batch, input_dims), jnp.float32)
    action = jax.random.normal(ka, (batch, n_actions), jnp.float32)
    params = init_params(kp, input_dims, hidden_dims, n_actions)

    fwd = jax.jit(functools.partial(critic_forward, num_layers=num_layers))
    q = fwd(observation, action, params)
    jax.block_until_ready(q)

    q_ref = reference_forward(observation, action, params, num_layers)
    assert q.shape == (batch, 1)
    assert jnp.allclose(q, q_ref, atol=1e-4, rtol=1e-4), (q, q_ref)

    # Larger batch: exercises multiple grid steps, resident params, edge padding,
    # and the adaptive tile_b (>= 2 steps for megacore sharding on v7x).
    batch2 = 300
    key, ko2, ka2 = jax.random.split(key, 3)
    obs2 = jax.random.normal(ko2, (batch2, input_dims), jnp.float32)
    act2 = jax.random.normal(ka2, (batch2, n_actions), jnp.float32)
    q2 = fwd(obs2, act2, params)
    jax.block_until_ready(q2)
    q2_ref = reference_forward(obs2, act2, params, num_layers)
    assert q2.shape == (batch2, 1)
    assert jnp.allclose(q2, q2_ref, atol=1e-4, rtol=1e-4)

    # TODO(synk): optimizer (Adam), save/load checkpointing, and device placement
    # from the PyTorch module are training/IO concerns with no kernel equivalent.
    print("KERNEL_OK")
</pallas_src>

<mosaic_0001>
module attributes {stable_mosaic.version = 11 : i64} {
  func.func @kernel(%arg0: i32, %arg1: memref<12x128xf32, #tpu.memory_space<vmem>>, %arg2: memref<32x8xf32, #tpu.memory_space<vmem>>, %arg3: memref<32x3xf32, #tpu.memory_space<vmem>>, %arg4: memref<32x32xf32, #tpu.memory_space<vmem>>, %arg5: memref<32x3xf32, #tpu.memory_space<vmem>>, %arg6: memref<32x4xf32, #tpu.memory_space<vmem>>, %arg7: memref<32x3xf32, #tpu.memory_space<vmem>>, %arg8: memref<1x128xf32, #tpu.memory_space<vmem>>) attributes {dimension_semantics = [#tpu.dimension_semantics<parallel>], iteration_bounds = array<i64: 1>, scalar_prefetch = 0 : i64, scratch_operands = 0 : i64, tpu.core_type = #tpu.core_type<tc>, window_params = [{transform_indices = @transform_0, window_bounds = array<i64: 12, 128>}, {pipeline_mode = #tpu.pipeline_mode<synchronous>, transform_indices = @transform_1, window_bounds = array<i64: 32, 8>}, {pipeline_mode = #tpu.pipeline_mode<synchronous>, transform_indices = @transform_2, window_bounds = array<i64: 32, 3>}, {pipeline_mode = #tpu.pipeline_mode<synchronous>, transform_indices = @transform_3, window_bounds = array<i64: 32, 32>}, {pipeline_mode = #tpu.pipeline_mode<synchronous>, transform_indices = @transform_4, window_bounds = array<i64: 32, 3>}, {pipeline_mode = #tpu.pipeline_mode<synchronous>, transform_indices = @transform_5, window_bounds = array<i64: 32, 4>}, {pipeline_mode = #tpu.pipeline_mode<synchronous>, transform_indices = @transform_6, window_bounds = array<i64: 32, 3>}, {transform_indices = @transform_7, window_bounds = array<i64: 1, 128>}]} {
    %c0 = arith.constant 0 : index
    %c0_0 = arith.constant 0 : index
    %0 = vector.load %arg1[%c0, %c0_0] : memref<12x128xf32, #tpu.memory_space<vmem>>, vector<8x128xf32>
    %c0_1 = arith.constant 0 : index
    %c0_2 = arith.constant 0 : index
    %1 = vector.load %arg2[%c0_1, %c0_2] : memref<32x8xf32, #tpu.memory_space<vmem>>, vector<32x8xf32>
    %c0_3 = arith.constant 0 : index
    %c0_4 = arith.constant 0 : index
    %2 = vector.load %arg3[%c0_3, %c0_4] : memref<32x3xf32, #tpu.memory_space<vmem>>, vector<32x3xf32>
    %cst = arith.constant dense<0.000000e+00> : vector<32x128xf32>
    %3 = tpu.matmul %1, %0, %cst {dimension_numbers = #tpu.dot_dimension_numbers<[1], [0], [0], [1], [0, 0, 1, 1], [], []>} : vector<32x8xf32>, vector<8x128xf32>, vector<32x128xf32> -> vector<32x128xf32>
    %4 = vector.extract_strided_slice %2 {offsets = [0, 0], sizes = [32, 1], strides = [1, 1]} : vector<32x3xf32> to vector<32x1xf32>
    %5 = vector.broadcast %4 : vector<32x1xf32> to vector<32x128xf32>
    %6 = arith.addf %3, %5 : vector<32x128xf32>
    %cst_5 = arith.constant dense<0.000000e+00> : vector<128xf32>
    %7 = vector.multi_reduction <add>, %6, %cst_5 [0] : vector<32x128xf32> to vector<128xf32>
    %8 = vector.shape_cast %7 : vector<128xf32> to vector<1x128xf32>
    %cst_6 = arith.constant 3.200000e+01 : f32
    %9 = vector.broadcast %cst_6 : f32 to vector<1x128xf32>
    %10 = arith.divf %8, %9 : vector<1x128xf32>
    %11 = vector.broadcast %10 : vector<1x128xf32> to vector<32x128xf32>
    %12 = arith.subf %6, %11 : vector<32x128xf32>
    %13 = arith.mulf %12, %12 : vector<32x128xf32>
    %cst_7 = arith.constant dense<0.000000e+00> : vector<128xf32>
    %14 = vector.multi_reduction <add>, %13, %cst_7 [0] : vector<32x128xf32> to vector<128xf32>
    %15 = vector.shape_cast %14 : vector<128xf32> to vector<1x128xf32>
    %cst_8 = arith.constant 3.200000e+01 : f32
    %16 = vector.broadcast %cst_8 : f32 to vector<1x128xf32>
    %17 = arith.divf %15, %16 : vector<1x128xf32>
    %cst_9 = arith.constant 9.99999974E-6 : f32
    %18 = vector.broadcast %cst_9 : f32 to vector<1x128xf32>
    %19 = arith.addf %17, %18 : vector<1x128xf32>
    %20 = math.rsqrt %19 : vector<1x128xf32>
    %21 = vector.broadcast %20 : vector<1x128xf32> to vector<32x128xf32>
    %22 = arith.mulf %12, %21 : vector<32x128xf32>
    %23 = vector.extract_strided_slice %2 {offsets = [0, 1], sizes = [32, 1], strides = [1, 1]} : vector<32x3xf32> to vector<32x1xf32>
    %24 = vector.broadcast %23 : vector<32x1xf32> to vector<32x128xf32>
    %25 = arith.mulf %22, %24 : vector<32x128xf32>
    %26 = vector.extract_strided_slice %2 {offsets = [0, 2], sizes = [32, 1], strides = [1, 1]} : vector<32x3xf32> to vector<32x1xf32>
    %27 = vector.broadcast %26 : vector<32x1xf32> to vector<32x128xf32>
    %28 = arith.addf %25, %27 : vector<32x128xf32>
    %cst_10 = arith.constant 0.000000e+00 : f32
    %29 = vector.broadcast %cst_10 : f32 to vector<32x128xf32>
    %30 = arith.maximumf %28, %29 : vector<32x128xf32>
    %c0_11 = arith.constant 0 : index
    %c0_12 = arith.constant 0 : index
    %31 = vector.load %arg4[%c0_11, %c0_12] : memref<32x32xf32, #tpu.memory_space<vmem>>, vector<32x32xf32>
    %c0_13 = arith.constant 0 : index
    %c0_14 = arith.constant 0 : index
    %32 = vector.load %arg5[%c0_13, %c0_14] : memref<32x3xf32, #tpu.memory_space<vmem>>, vector<32x3xf32>
    %cst_15 = arith.constant dense<0.000000e+00> : vector<32x128xf32>
    %33 = tpu.matmul %31, %30, %cst_15 {dimension_numbers = #tpu.dot_dimension_numbers<[1], [0], [0], [1], [0, 0, 1, 1], [], []>} : vector<32x32xf32>, vector<32x128xf32>, vector<32x128xf32> -> vector<32x128xf32>
    %34 = vector.extract_strided_slice %32 {offsets = [0, 0], sizes = [32, 1], strides = [1, 1]} : vector<32x3xf32> to vector<32x1xf32>
    %35 = vector.broadcast %34 : vector<32x1xf32> to vector<32x128xf32>
    %36 = arith.addf %33, %35 : vector<32x128xf32>
    %cst_16 = arith.constant dense<0.000000e+00> : vector<128xf32>
    %37 = vector.multi_reduction <add>, %36, %cst_16 [0] : vector<32x128xf32> to vector<128xf32>
    %38 = vector.shape_cast %37 : vector<128xf32> to vector<1x128xf32>
    %cst_17 = arith.constant 3.200000e+01 : f32
    %39 = vector.broadcast %cst_17 : f32 to vector<1x128xf32>
    %40 = arith.divf %38, %39 : vector<1x128xf32>
    %41 = vector.broadcast %40 : vector<1x128xf32> to vector<32x128xf32>
    %42 = arith.subf %36, %41 : vector<32x128xf32>
    %43 = arith.mulf %42, %42 : vector<32x128xf32>
    %cst_18 = arith.constant dense<0.000000e+00> : vector<128xf32>
    %44 = vector.multi_reduction <add>, %43, %cst_18 [0] : vector<32x128xf32> to vector<128xf32>
    %45 = vector.shape_cast %44 : vector<128xf32> to vector<1x128xf32>
    %cst_19 = arith.constant 3.200000e+01 : f32
    %46 = vector.broadcast %cst_19 : f32 to vector<1x128xf32>
    %47 = arith.divf %45, %46 : vector<1x128xf32>
    %cst_20 = arith.constant 9.99999974E-6 : f32
    %48 = vector.broadcast %cst_20 : f32 to vector<1x128xf32>
    %49 = arith.addf %47, %48 : vector<1x128xf32>
    %50 = math.rsqrt %49 : vector<1x128xf32>
    %51 = vector.broadcast %50 : vector<1x128xf32> to vector<32x128xf32>
    %52 = arith.mulf %42, %51 : vector<32x128xf32>
    %53 = vector.extract_strided_slice %32 {offsets = [0, 1], sizes = [32, 1], strides = [1, 1]} : vector<32x3xf32> to vector<32x1xf32>
    %54 = vector.broadcast %53 : vector<32x1xf32> to vector<32x128xf32>
    %55 = arith.mulf %52, %54 : vector<32x128xf32>
    %56 = vector.extract_strided_slice %32 {offsets = [0, 2], sizes = [32, 1], strides = [1, 1]} : vector<32x3xf32> to vector<32x1xf32>
    %57 = vector.broadcast %56 : vector<32x1xf32> to vector<32x128xf32>
    %58 = arith.addf %55, %57 : vector<32x128xf32>
    %c0_21 = arith.constant 0 : index
    %c0_22 = arith.constant 0 : index
    %59 = vector.load %arg6[%c0_21, %c0_22] : memref<32x4xf32, #tpu.memory_space<vmem>>, vector<32x4xf32>
    %c0_23 = arith.constant 0 : index
    %c0_24 = arith.constant 0 : index
    %60 = vector.load %arg7[%c0_23, %c0_24] : memref<32x3xf32, #tpu.memory_space<vmem>>, vector<32x3xf32>
    %c8 = arith.constant 8 : index
    %c0_25 = arith.constant 0 : index
    %61 = vector.load %arg1[%c8, %c0_25] : memref<12x128xf32, #tpu.memory_space<vmem>>, vector<4x128xf32>
    %cst_26 = arith.constant dense<0.000000e+00> : vector<32x128xf32>
    %62 = tpu.matmul %59, %61, %cst_26 {dimension_numbers = #tpu.dot_dimension_numbers<[1], [0], [0], [1], [0, 0, 1, 1], [], []>} : vector<32x4xf32>, vector<4x128xf32>, vector<32x128xf32> -> vector<32x128xf32>
    %63 = vector.extract_strided_slice %60 {offsets = [0, 0], sizes = [32, 1], strides = [1, 1]} : vector<32x3xf32> to vector<32x1xf32>
    %64 = vector.broadcast %63 : vector<32x1xf32> to vector<32x128xf32>
    %65 = arith.addf %62, %64 : vector<32x128xf32>
    %66 = arith.addf %58, %65 : vector<32x128xf32>
    %cst_27 = arith.constant 0.000000e+00 : f32
    %67 = vector.broadcast %cst_27 : f32 to vector<32x128xf32>
    %68 = arith.maximumf %66, %67 : vector<32x128xf32>
    %69 = vector.extract_strided_slice %60 {offsets = [0, 1], sizes = [32, 1], strides = [1, 1]} : vector<32x3xf32> to vector<32x1xf32>
    %70 = vector.broadcast %69 : vector<32x1xf32> to vector<32x128xf32>
    %71 = arith.mulf %68, %70 : vector<32x128xf32>
    %cst_28 = arith.constant dense<0.000000e+00> : vector<128xf32>
    %72 = vector.multi_reduction <add>, %71, %cst_28 [0] : vector<32x128xf32> to vector<128xf32>
    %73 = vector.shape_cast %72 : vector<128xf32> to vector<1x128xf32>
    %74 = vector.extract_strided_slice %60 {offsets = [0, 2], sizes = [1, 1], strides = [1, 1]} : vector<32x3xf32> to vector<1x1xf32>
    %75 = vector.broadcast %74 : vector<1x1xf32> to vector<1x128xf32>
    %76 = arith.addf %73, %75 : vector<1x128xf32>
    %c0_29 = arith.constant 0 : index
    %c0_30 = arith.constant 0 : index
    %77 = vector.load %arg8[%c0_29, %c0_30] : memref<1x128xf32, #tpu.memory_space<vmem>>, vector<1x128xf32>
    tpu.vector_store %arg8[%c0_29, %c0_30], %76 {strides = array<i32>} : memref<1x128xf32, #tpu.memory_space<vmem>>, vector<1x128xf32>,
    return
  }
  func.func @transform_0(%arg0: i32) -> (i32, i32) {
    %c0_i32 = arith.constant 0 : i32
    %c0_i32_0 = arith.constant 0 : i32
    return %c0_i32, %arg0 : i32, i32
  }
  func.func @transform_1(%arg0: i32) -> (i32, i32) {
    %c0_i32 = arith.constant 0 : i32
    %c0_i32_0 = arith.constant 0 : i32
    %c0_i32_1 = arith.constant 0 : i32
    return %c0_i32, %c0_i32_0 : i32, i32
  }
  func.func @transform_2(%arg0: i32) -> (i32, i32) {
    %c0_i32 = arith.constant 0 : i32
    %c0_i32_0 = arith.constant 0 : i32
    %c0_i32_1 = arith.constant 0 : i32
    return %c0_i32, %c0_i32_0 : i32, i32
  }
  func.func @transform_3(%arg0: i32) -> (i32, i32) {
    %c0_i32 = arith.constant 0 : i32
    %c0_i32_0 = arith.constant 0 : i32
    %c0_i32_1 = arith.constant 0 : i32
    return %c0_i32, %c0_i32_0 : i32, i32
  }
  func.func @transform_4(%arg0: i32) -> (i32, i32) {
    %c0_i32 = arith.constant 0 : i32
    %c0_i32_0 = arith.constant 0 : i32
    %c0_i32_1 = arith.constant 0 : i32
    return %c0_i32, %c0_i32_0 : i32, i32
  }
  func.func @transform_5(%arg0: i32) -> (i32, i32) {
    %c0_i32 = arith.constant 0 : i32
    %c0_i32_0 = arith.constant 0 : i32
    %c0_i32_1 = arith.constant 0 : i32
    return %c0_i32, %c0_i32_0 : i32, i32
  }
  func.func @transform_6(%arg0: i32) -> (i32, i32) {
    %c0_i32 = arith.constant 0 : i32
    %c0_i32_0 = arith.constant 0 : i32
    %c0_i32_1 = arith.constant 0 : i32
    return %c0_i32, %c0_i32_0 : i32, i32
  }
  func.func @transform_7(%arg0: i32) -> (i32, i32) {
    %c0_i32 = arith.constant 0 : i32
    %c0_i32_0 = arith.constant 0 : i32
    return %c0_i32, %arg0 : i32, i32
  }
}

</mosaic_0001>

<bundles_post_ra>
// kernel: critic_forward.1
= control target key start
LH: loop header
LB: loop body
LE: loop exit
PB: predicated region body
PF: predicated region fallthrough
CT: control target
= control target key end

     0   :  { %vm55_vm0 = vcmask 64512   ;;  %v705_v2 = vmov 0   ;;  %v706_v10 = vmov 1   ;;  %v707_v11 = vmov 2   ;;  %s865_s0 = inlined_call_operand.vmem [shape: f32[12,128], index: 0, kind: input, shape index: {}]   ;;  %s866_s1 = inlined_call_operand.vmem [shape: f32[32,8], index: 1, kind: input, shape index: {}]   ;;  %s867_s2 = inlined_call_operand.vmem [shape: f32[32,3], index: 2, kind: input, shape index: {}]   ;;  %s868_s3 = inlined_call_operand.vmem [shape: f32[32,32], index: 3, kind: input, shape index: {}]   ;;  %s869_s5 = inlined_call_operand.vmem [shape: f32[32,4], index: 5, kind: input, shape index: {}]   ;;  %s870_s4 = inlined_call_operand.vmem [shape: f32[32,3], index: 4, kind: input, shape index: {}]   ;;  %s871_s6 = inlined_call_operand.vmem [shape: f32[32,3], index: 6, kind: input, shape index: {}]   ;;  %s872_s7 = inlined_call_operand.vmem [shape: f32[1,128], index: 7, kind: output, shape index: {}]  }
   0x1   :  { %v26_v0 = vld [vmem:[%s865_s0] sm:$0xff]  ;;  %682 = vset.pattern.permute.xlu0 %v705_v2  ;;  %683 = vset.pattern.permute.xlu1 %v705_v2  ;;  %v28_v3 = vld [vmem:[%s866_s1 + $0x8] sm:$0xff]  ;;  %v29_v4 = vld [vmem:[%s866_s1 + $0x10] sm:$0xff]  ;;  %vm260_vm1 = vcmask 261120   ;;  %vm474_vm2 = vcmask 1043456   ;;  %vm461_vm3 = vcmask 31744  }
   0x2   :  { %v27_v1 = vld [vmem:[%s866_s1] sm:$0xff]  ;;  %641 = vmatprep.subr.mxu0 %v26_v0  ;;  %v33_v6 = vld [vmem:[%s867_s2 + $0x10] sm:$0xff]  ;;  %v30_v7 = vld [vmem:[%s866_s1 + $0x18] sm:$0xff] }
   0x3   :  { %643 = vmatprep.mubr.msk.f32.mxu0 %vm55_vm0, %v27_v1  ;;  %642 = vmatpush3.msra.mxu0 %v26_v0  ;;  %v31_v5 = vld [vmem:[%s867_s2] sm:$0xff]  ;;  %v32_v8 = vld [vmem:[%s867_s2 + $0x8] sm:$0xff]  ;;  %v34_v9 = vld [vmem:[%s867_s2 + $0x18] sm:$0xff] }
   0x4   :  { %644 = vmatmul.mubr.msk.f32.vlgmr.msra.gmra.mrb[0].mxu0 %vm55_vm0, %v28_v3  ;;  %37 = vperm.xlu0 %682, %v31_v5   ;;  %v232_v12 = vld [vmem:[%s868_s3] sm:$0xff]  ;;  %v440_v13 = vld [vmem:[%s865_s0 + $0x8] sm:$0xf]  ;;  %v434_v16 = vld [vmem:[%s869_s5 + $0x10] sm:$0xff] }
   0x5   :  { %646 = vmatprep.mubr.msk.f32.mxu0 %vm55_vm0, %v29_v4  ;;  %47 = vperm.xlu1 %683, %v33_v6   ;;  %v432_v14 = vld [vmem:[%s869_s5] sm:$0xff]  ;;  %v433_v15 = vld [vmem:[%s869_s5 + $0x8] sm:$0xff]  ;;  %v435_v19 = vld [vmem:[%s869_s5 + $0x18] sm:$0xff] }
   0x6   :  { %657 = vmatprep.mubr.msk.f32.mxu1 %vm260_vm1, %v232_v12  ;;  %663 = vmatprep.subr.msk.mxu0 %vm474_vm2, %v440_v13  ;;  %v237_v17 = vld [vmem:[%s870_s4 + $0x8] sm:$0xff]  ;;  %v236_v18 = vld [vmem:[%s870_s4] sm:$0xff]  ;;  %v238_v20 = vld [vmem:[%s870_s4 + $0x10] sm:$0xff] }
   0x7   :  { %664 = vmatpush3.msk.msra.mxu0 %vm474_vm2, %v440_v13  ;;  %v239_v21 = vld [vmem:[%s870_s4 + $0x18] sm:$0xff]  ;;  %v436_v22 = vld [vmem:[%s871_s6] sm:$0xff]  ;;  %v437_v23 = vld [vmem:[%s871_s6 + $0x8] sm:$0xff] }
   0x8   :  { %647 = vmatmul.mubr.msk.f32.gmra.mrb[2].mxu0 %vm55_vm0, %v30_v7  ;;  %42 = vperm.xlu0 %682, %v32_v8   ;;  %v438_v25 = vld [vmem:[%s871_s6 + $0x10] sm:$0xff]  ;;  %v439_v27 = vld [vmem:[%s871_s6 + $0x18] sm:$0xff] }
   0x9   :  { %52 = vperm.xlu1 %683, %v34_v9   ;;  %665 = vmatprep.mubr.msk.f32.mxu0 %vm461_vm3, %v432_v14 }
   0xc   :  { %684 = vset.pattern.permute.xlu0 %v706_v10  ;;  %666 = vmatmul.mubr.msk.f32.vlgmr.msra.gmra.mrb[4].mxu0 %vm461_vm3, %v433_v15 }
   0xd   :  { %685 = vset.pattern.permute.xlu1 %v706_v10  ;;  %189 = vperm.xlu0 %684, %v31_v5  }
   0xe   :  { %193 = vperm.xlu1 %685, %v32_v8   ;;  %668 = vmatprep.mubr.msk.f32.mxu0 %vm461_vm3, %v434_v16 }
  0x10   :  { %669 = vmatmul.mubr.msk.f32.gmra.mrb[6].mxu0 %vm461_vm3, %v435_v19 }
  0x11   :  { %687 = vset.pattern.permute.xlu0 %v707_v11 }
  0x12   :  { %686 = vset.pattern.permute.xlu1 %v707_v11  ;;  %213 = vperm.xlu0 %687, %v32_v8  }
  0x13   :  { %209 = vperm.xlu1 %686, %v31_v5  }
  0x16   :  { %217 = vperm.xlu0 %687, %v33_v6  }
  0x17   :  { %688 = vset.pattern.permute.xlu1 %v706_v10 }
  0x18   :  { %197 = vperm.xlu1 %688, %v33_v6  }
  0x1a   :  { %690 = vset.pattern.permute.xlu0 %v705_v2 }
  0x1b   :  { %242 = vperm.xlu0 %690, %v236_v18  }
  0x1c   :  { %201 = vperm.xlu1 %688, %v34_v9  }
  0x1f   :  { %257 = vperm.xlu0 %690, %v239_v21  }
  0x20   :  { %689 = vset.pattern.permute.xlu1 %v707_v11 }
  0x21   :  { %221 = vperm.xlu1 %689, %v34_v9  }
  0x23   :  { %694 = vset.pattern.permute.xlu0 %v707_v11 }
  0x24   :  { %417 = vperm.xlu0 %694, %v237_v17  }
  0x25   :  { %691 = vset.pattern.permute.xlu1 %v705_v2 }
  0x26   :  { %247 = vperm.xlu1 %691, %v237_v17  }
  0x28   :  { %425 = vperm.xlu0 %694, %v239_v21  }
  0x2a   :  { %252 = vperm.xlu1 %691, %v238_v20  }
  0x2c   :  { %698 = vset.pattern.permute.xlu0 %v706_v10 }
  0x2d   :  { %397 = vperm.xlu0 %698, %v237_v17  }
  0x2e   :  { %692 = vset.pattern.permute.xlu1 %v706_v10 }
  0x2f   :  { %393 = vperm.xlu1 %692, %v236_v18  }
  0x31   :  { %405 = vperm.xlu0 %698, %v239_v21  }
  0x33   :  { %401 = vperm.xlu1 %692, %v238_v20  }
  0x35   :  { %576 = vperm.xlu0 %698, %v437_v23  }
  0x37   :  { %693 = vset.pattern.permute.xlu1 %v707_v11 }
  0x38   :  { %413 = vperm.xlu1 %693, %v236_v18  }
  0x39   :  { %700 = vset.pattern.permute.xlu0 %v707_v11 }
  0x3a   :  { %601 = vperm.xlu0 %700, %v436_v22  }
  0x3c   :  { %695 = vset.pattern.permute.xlu1 %v705_v2 }
  0x3d   :  { %443 = vperm.xlu1 %695, %v436_v22  }
  0x41   :  { %448 = vperm.xlu1 %695, %v437_v23  }
  0x45   :  { %696 = vset.pattern.permute.xlu1 %v707_v11 }
  0x46   :  { %421 = vperm.xlu1 %696, %v238_v20  }
  0x4a   :  { %697 = vset.pattern.permute.xlu1 %v705_v2 }
  0x4b   :  { %453 = vperm.xlu1 %697, %v438_v25  }
  0x4f   :  { %458 = vperm.xlu1 %697, %v439_v27  }
  0x53   :  { %699 = vset.pattern.permute.xlu1 %v706_v10 }
  0x54   :  { %572 = vperm.xlu1 %699, %v436_v22  }
  0x58   :  { %580 = vperm.xlu1 %699, %v438_v25  }
  0x5c   :  { %584 = vperm.xlu1 %699, %v439_v27  }
  0x83   :  { %v38_v24 = vpop.permute.xlu0 %37 }
  0x84   :  { %v48_v28 = vpop.permute.xlu1 %47 }
  0x87   :  { %v43_v26 = vpop.permute.xlu0 %42 }
  0x88   :  { %v53_v35 = vpop.permute.xlu1 %52 }
  0x8c   :  { %v190_v6 = vpop.permute.xlu0 %189 }
  0x8d   :  { %v194_v61 = vpop.permute.xlu1 %193 }
  0x91   :  { %v214_v8 = vpop.permute.xlu0 %213 }
  0x92   :  { %v210_v2 = vpop.permute.xlu1 %209 }
  0x95   :  { %v218_v15 = vpop.permute.xlu0 %217 }
  0x97   :  { %v198_v5 = vpop.permute.xlu1 %197 }
  0x9b   :  { %v202_v7 = vpop.permute.xlu1 %201 }
  0xa0   :  { %v222_v14 = vpop.permute.xlu1 %221 }
  0xd7   :  { %v645_v29 = vpop.f32.mrb[0].mxu0 }
  0xd8   :  { %v140_v30 = vadd.f32 %v645_v29, %v43_v26  ;;  %v134_v31 = vpop.f32.mrb[1].mxu0 }
  0xd9   :  { %v135_v32 = vadd.f32 %v134_v31, %v38_v24  ;;  %v234_v31 = vld [vmem:[%s868_s3 + $0x10] sm:$0xff] }
  0xdb   :  { %v153_v33 = vadd.f32 %v140_v30, %v135_v32  ;;  %v648_v34 = vpop.f32.mrb[2].mxu0 }
  0xdc   :  { %v144_v36 = vpop.f32.mrb[3].mxu0  ;;  %v150_v38 = vadd.f32 %v648_v34, %v53_v35 }
  0xdd   :  { %v145_v37 = vadd.f32 %v144_v36, %v48_v28 }
  0xdf   :  { %v154_v39 = vadd.f32 %v153_v33, %v145_v37  ;;  %v850_v33 = vpop.f32.mrb[4].mxu0 }
  0xe0   :  { %v852_v34 = vpop.f32.mrb[5].mxu0 }
  0xe1   :  { %v155_v40 = vadd.f32 %v154_v39, %v150_v38 }
  0xe3   :  { %v156_v41 = vrot.slane %v155_v40, 4  ;;  %v854_v35 = vpop.f32.mrb[6].mxu0 }
  0xe4   :  { %v856_v36 = vpop.f32.mrb[7].mxu0 }
  0xe5   :  { %v157_v42 = vadd.f32 %v156_v41, %v155_v40 }
  0xe7   :  { %v158_v43 = vrot.slane %v157_v42, 2 }
  0xe9   :  { %v159_v44 = vadd.f32 %v158_v43, %v157_v42 }
  0xeb   :  { %v160_v45 = vrot.slane %v159_v44, 1 }
  0xed   :  { %v161_v46 = vadd.f32 %v160_v45, %v159_v44 }
  0xef   :  { %v163_v47 = vmul.f32 0.03125, %v161_v46 }
  0xf1   :  { %v166_v48 = vsub.f32 %v145_v37, %v163_v47  ;;  %v167_v49 = vsub.f32 %v150_v38, %v163_v47  ;;  %v164_v50 = vsub.f32 %v135_v32, %v163_v47  ;;  %v165_v51 = vsub.f32 %v140_v30, %v163_v47  ;;  %v233_v30 = vld [vmem:[%s868_s3 + $0x8] sm:$0xff]  ;;  %v235_v32 = vld [vmem:[%s868_s3 + $0x18] sm:$0xff]  ;;  %v248_v37 = vpop.permute.xlu1 %247  ;;  %v243_v38 = vpop.permute.xlu0 %242 }
  0xf3   :  { %v168_v52 = vmul.f32 %v164_v50, %v164_v50  ;;  %v169_v53 = vmul.f32 %v165_v51, %v165_v51  ;;  %v170_v54 = vmul.f32 %v166_v48, %v166_v48  ;;  %v171_v56 = vmul.f32 %v167_v49, %v167_v49 }
  0xf5   :  { %v172_v55 = vadd.f32 %v169_v53, %v168_v52  ;;  %v253_v43 = vpop.permute.xlu1 %252  ;;  %v258_v46 = vpop.permute.xlu0 %257 }
  0xf7   :  { %v173_v57 = vadd.f32 %v172_v55, %v170_v54 }
  0xf9   :  { %v174_v58 = vadd.f32 %v173_v57, %v171_v56  ;;  %v394_v55 = vpop.permute.xlu1 %393 }
  0xfb   :  { %v175_v59 = vrot.slane %v174_v58, 4 }
  0xfd   :  { %v176_v60 = vadd.f32 %v175_v59, %v174_v58  ;;  %v402_v59 = vpop.permute.xlu1 %401 }
  0xff   :  { %v177_v62 = vrot.slane %v176_v60, 2 }
 0x101   :  { %v178_v63 = vadd.f32 %v177_v62, %v176_v60 }
 0x103   :  { %v179_v0 = vrot.slane %v178_v63, 1 }
 0x105   :  { %v180_v1 = vadd.f32 %v179_v0, %v178_v63 }
 0x107   :  { %v181_v3 = vmul.f32 0.03125, %v180_v1 }
 0x109   :  { %v182_v4 = vadd.f32 1e-05, %v181_v3  ;;  %v414_v3 = vpop.permute.xlu1 %413 }
 0x10b   :  { %701 = vrsqrt.f32 %v182_v4 }
 0x115   :  { %v702_v9 = vpop.eup %701 }
 0x116   :  { %v185_v10 = vmul.f32 %v702_v9, %v165_v51  ;;  %v186_v11 = vmul.f32 %v702_v9, %v166_v48  ;;  %v184_v12 = vmul.f32 %v702_v9, %v164_v50  ;;  %v187_v13 = vmul.f32 %v702_v9, %v167_v49  ;;  %v444_v9 = vpop.permute.xlu1 %443 }
 0x118   :  { %v205_v16 = vmul.f32 %v194_v61, %v185_v10  ;;  %v206_v17 = vmul.f32 %v198_v5, %v186_v11  ;;  %v204_v18 = vmul.f32 %v190_v6, %v184_v12  ;;  %v207_v19 = vmul.f32 %v202_v7, %v187_v13 }
 0x11a   :  { %v224_v20 = vadd.f32 %v210_v2, %v204_v18  ;;  %v225_v21 = vadd.f32 %v214_v8, %v205_v16  ;;  %v227_v22 = vadd.f32 %v222_v14, %v207_v19  ;;  %v226_v23 = vadd.f32 %v218_v15, %v206_v17  ;;  %v449_v13 = vpop.permute.xlu1 %448  ;;  %v418_v18 = vpop.permute.xlu0 %417 }
 0x11c   :  { %v228_v24 = vmax.f32 %v224_v20, 0.0  ;;  %v229_v25 = vmax.f32 %v225_v21, 0.0  ;;  %v231_v26 = vmax.f32 %v227_v22, 0.0  ;;  %v230_v27 = vmax.f32 %v226_v23, 0.0 }
 0x11e   :  { %v675_v28 = vpack.c.bf16 %v231_v26, %v230_v27  ;;  %v671_v29 = vpack.c.bf16 %v229_v25, %v228_v24  ;;  %v422_v17 = vpop.permute.xlu1 %421  ;;  %v426_v22 = vpop.permute.xlu0 %425 }
 0x120   :  { %672 = vmatprep.subr.bf16.mxu1 %v671_v29 }
 0x121   :  { %674 = vmatpush3.bf16.msra.mxu1 %v671_v29 }
 0x122   :  { %676 = vmatprep.subr.bf16.mxu1 %v675_v28  ;;  %v454_v21 = vpop.permute.xlu1 %453  ;;  %v398_v24 = vpop.permute.xlu0 %397 }
 0x125   :  { %678 = vmatpush3.bf16.msra.mxu1 %v675_v28 }
 0x126   :  { %v459_v23 = vpop.permute.xlu1 %458 }
 0x128   :  { %658 = vmatmul.mubr.msk.f32.vlgmr.msra.gmra.mrb[0].mxu1 %vm260_vm1, %v233_v30 }
 0x129   :  { %660 = vmatprep.mubr.msk.f32.mxu1 %vm260_vm1, %v234_v31  ;;  %v406_v31 = vpop.permute.xlu0 %405 }
 0x12a   :  { %v573_v30 = vpop.permute.xlu1 %572 }
 0x12c   :  { %661 = vmatmul.mubr.msk.f32.gmra.mrb[2].mxu1 %vm260_vm1, %v235_v32 }
 0x1fb   :  { %v659_v39 = vpop.f32.mrb[0].mxu1 }
 0x1fc   :  { %v345_v40 = vadd.f32 %v659_v39, %v248_v37  ;;  %v339_v41 = vpop.f32.mrb[1].mxu1 }
 0x1fd   :  { %v340_v42 = vadd.f32 %v339_v41, %v243_v38  ;;  %v545_v41 = vadd.f32 %v852_v34, %v444_v9 }
 0x1ff   :  { %v358_v44 = vadd.f32 %v345_v40, %v340_v42  ;;  %v662_v45 = vpop.f32.mrb[2].mxu1 }
 0x200   :  { %v349_v47 = vpop.f32.mrb[3].mxu1  ;;  %v355_v49 = vadd.f32 %v662_v45, %v258_v46 }
 0x201   :  { %v350_v48 = vadd.f32 %v349_v47, %v253_v43  ;;  %v555_v43 = vadd.f32 %v856_v36, %v454_v21 }
 0x203   :  { %v359_v50 = vadd.f32 %v358_v44, %v350_v48 }
 0x205   :  { %v360_v51 = vadd.f32 %v359_v50, %v355_v49 }
 0x207   :  { %v361_v52 = vrot.slane %v360_v51, 4 }
 0x209   :  { %v362_v53 = vadd.f32 %v361_v52, %v360_v51  ;;  %v581_v52 = vpop.permute.xlu1 %580 }
 0x20b   :  { %v363_v54 = vrot.slane %v362_v53, 2 }
 0x20d   :  { %v364_v56 = vadd.f32 %v363_v54, %v362_v53 }
 0x20f   :  { %v365_v57 = vrot.slane %v364_v56, 1 }
 0x211   :  { %v366_v58 = vadd.f32 %v365_v57, %v364_v56  ;;  %v577_v56 = vpop.permute.xlu0 %576 }
 0x213   :  { %v367_v60 = vmul.f32 0.03125, %v366_v58 }
 0x215   :  { %v370_v61 = vsub.f32 %v350_v48, %v367_v60  ;;  %v368_v62 = vsub.f32 %v340_v42, %v367_v60  ;;  %v369_v63 = vsub.f32 %v345_v40, %v367_v60  ;;  %v371_v0 = vsub.f32 %v355_v49, %v367_v60 }
 0x216   :  { %v550_v40 = vadd.f32 %v850_v33, %v449_v13  ;;  %v560_v42 = vadd.f32 %v854_v35, %v459_v23 }
 0x217   :  { %v372_v1 = vmul.f32 %v368_v62, %v368_v62  ;;  %v373_v2 = vmul.f32 %v369_v63, %v369_v63  ;;  %v374_v4 = vmul.f32 %v370_v61, %v370_v61  ;;  %v375_v6 = vmul.f32 %v371_v0, %v371_v0 }
 0x219   :  { %v376_v5 = vadd.f32 %v373_v2, %v372_v1 }
 0x21b   :  { %v377_v7 = vadd.f32 %v376_v5, %v374_v4 }
 0x21d   :  { %v378_v8 = vadd.f32 %v377_v7, %v375_v6 }
 0x21f   :  { %v379_v10 = vrot.slane %v378_v8, 4 }
 0x221   :  { %v380_v11 = vadd.f32 %v379_v10, %v378_v8 }
 0x223   :  { %v381_v12 = vrot.slane %v380_v11, 2 }
 0x225   :  { %v382_v14 = vadd.f32 %v381_v12, %v380_v11 }
 0x227   :  { %v383_v15 = vrot.slane %v382_v14, 1 }
 0x229   :  { %v384_v16 = vadd.f32 %v383_v15, %v382_v14 }
 0x22b   :  { %v385_v19 = vmul.f32 0.03125, %v384_v16 }
 0x22d   :  { %v386_v20 = vadd.f32 1e-05, %v385_v19 }
 0x22f   :  { %703 = vrsqrt.f32 %v386_v20 }
 0x239   :  { %v704_v25 = vpop.eup %703 }
 0x23a   :  { %v388_v26 = vmul.f32 %v704_v25, %v368_v62  ;;  %v390_v27 = vmul.f32 %v704_v25, %v370_v61  ;;  %v389_v28 = vmul.f32 %v704_v25, %v369_v63  ;;  %v391_v29 = vmul.f32 %v704_v25, %v371_v0 }
 0x23c   :  { %v408_v32 = vmul.f32 %v394_v55, %v388_v26  ;;  %v410_v37 = vmul.f32 %v402_v59, %v390_v27  ;;  %v409_v38 = vmul.f32 %v398_v24, %v389_v28  ;;  %v411_v39 = vmul.f32 %v406_v31, %v391_v29  ;;  %v585_v59 = vpop.permute.xlu1 %584 }
 0x23e   :  { %v428_v44 = vadd.f32 %v414_v3, %v408_v32  ;;  %v430_v45 = vadd.f32 %v422_v17, %v410_v37  ;;  %v429_v46 = vadd.f32 %v418_v18, %v409_v38  ;;  %v431_v47 = vadd.f32 %v426_v22, %v411_v39  ;;  %v602_v3 = vpop.permute.xlu0 %601 }
 0x240   :  { %v563_v48 = vadd.f32 %v545_v41, %v428_v44  ;;  %v565_v49 = vadd.f32 %v555_v43, %v430_v45  ;;  %v564_v50 = vadd.f32 %v550_v40, %v429_v46  ;;  %v566_v51 = vadd.f32 %v560_v42, %v431_v47 }
 0x242   :  { %v567_v53 = vmax.f32 %v563_v48, 0.0  ;;  %v569_v54 = vmax.f32 %v565_v49, 0.0  ;;  %v568_v55 = vmax.f32 %v564_v50, 0.0  ;;  %v570_v34 = vmax.f32 %v566_v51, 0.0 }
 0x244   :  { %v587_v33 = vmul.f32 %v573_v30, %v567_v53  ;;  %v588_v57 = vmul.f32 %v577_v56, %v568_v55  ;;  %v589_v58 = vmul.f32 %v581_v52, %v569_v54  ;;  %v590_v36 = vmul.f32 %v585_v59, %v570_v34 }
 0x246   :  { %v591_v35 = vadd.f32 %v588_v57, %v587_v33 }
 0x248   :  { %v592_v60 = vadd.f32 %v591_v35, %v589_v58 }
 0x24a   :  { %v593_v61 = vadd.f32 %v592_v60, %v590_v36 }
 0x24c   :  { %v594_v62 = vrot.slane %v593_v61, 4 }
 0x24e   :  { %v595_v63 = vadd.f32 %v594_v62, %v593_v61 }
 0x250   :  { %v596_v0 = vrot.slane %v595_v63, 2 }
 0x252   :  { %v597_v1 = vadd.f32 %v596_v0, %v595_v63 }
 0x254   :  { %v598_v2 = vrot.slane %v597_v1, 1 }
 0x256   :  { %v599_v4 = vadd.f32 %v598_v2, %v597_v1 }
 0x258   :  { %v604_v5 = vadd.f32 %v602_v3, %v599_v4 }
 0x25a   :  { %605 = vst [vmem:[%s872_s7] sm:$0x1] %v604_v5 }

</bundles_post_ra>
